<compile_context>
chip_gen: v7x
topology: tpu7x:2x2x1
jax: 0.10.0
libtpu: 0.0.40
codegen_flags: <defaults>
</compile_context>

<pallas_src>
import functools
import math

import numpy as np
import jax
import jax.numpy as jnp
from jax.experimental import pallas as pl
from jax.experimental.pallas import tpu as pltpu

L_DIM = 512   # self.L (input_dim / mlp_dim)
D_DIM = 128   # self.D
K_DIM = 1     # self.K


def _round_up(a, b):
    return ((a + b - 1) // b) * b


def _round_down(a, b):
    return (a // b) * b


def _chip_caps():
    """Generation-aware (max x-block bytes, scoped-VMEM cap)."""
    try:
        vmem = int(getattr(pltpu.get_tpu_info(), "vmem_capacity_bytes", 128 << 20))
    except Exception:                       # unknown chip / query failure
        vmem = 64 << 20
    if vmem <= (64 << 20):                  # v7x-like: 64 MiB per TensorCore
        return (3 << 20), (48 << 20)
    return (8 << 20), (100 << 20)           # v5e / v6e: 128 MiB physical VMEM


def _attention_kernel(x_ref, w1_ref, w2_ref,
                      pooled_ref, logits_ref, m_ref, l_ref,
                      m_sc, l_sc, acc_sc, *, n_valid, mask_tokens):
    """One (bag-block, token-chunk) grid step of MIL attention pooling."""
    t = pl.program_id(1)
    n_chunks = pl.num_programs(1)

    @pl.when(t == 0)
    def _():
        m_sc[...] = jnp.full_like(m_sc, -jnp.inf)
        l_sc[...] = jnp.zeros_like(l_sc)
        acc_sc[...] = jnp.zeros_like(acc_sc)

    x = x_ref[...]                                        # (bt, tn, L)  bf16
    bt, tn, feat = x.shape

    # Linear(L->D) as one dense 2-D MXU matmul (bf16 in, f32 accumulate).
    h = jnp.dot(x.reshape(bt * tn, feat), w1_ref[...],
                preferred_element_type=jnp.float32)       # (bt*tn, D)
    h = jnp.maximum(h, 0.0)                               # ReLU (VPU)

    # Linear(D->1): VPU broadcast-multiply + lane reduce (no 1-wide matmul).
    s = jnp.sum(h * w2_ref[...], axis=-1, keepdims=True)  # (bt*tn, 1)
    s = s.reshape(bt, tn, 1)                              # tokens -> sublanes

    if mask_tokens:   # static: only when N was padded up to the token tile
        tok = t * tn + jax.lax.broadcasted_iota(jnp.int32, (bt, tn, 1), 1)
        s = jnp.where(tok < n_valid, s, -1e30)

    # Raw attention logits for this chunk (lane-dense per-chunk block store).
    logits_ref[...] = s[:, :, 0]

    # Online softmax over the token axis; pooled accumulation stays f32.
    m_prev = m_sc[...]                                              # (bt,1,1)
    m_new = jnp.maximum(m_prev, jnp.max(s, axis=1, keepdims=True))  # (bt,1,1)
    alpha = jnp.exp(m_prev - m_new)
    e = jnp.exp(s - m_new)                                          # (bt,tn,1)
    l_sc[...] = alpha * l_sc[...] + jnp.sum(e, axis=1, keepdims=True)
    acc_sc[...] = alpha * acc_sc[...] + jnp.sum(e * x, axis=1, keepdims=True)
    m_sc[...] = m_new

    @pl.when(t == n_chunks - 1)
    def _():
        inv_l = 1.0 / l_sc[...]                       # exact; negligible cost
        pooled_ref[...] = (acc_sc[...] * inv_l)[:, 0, :].astype(pooled_ref.dtype)
        m_ref[...] = m_sc[...][:, 0, :]
        l_ref[...] = l_sc[...][:, 0, :]


def attention_forward(x, w1, w2_row, *, no_norm=False,
                      stream_dtype=jnp.bfloat16, token_tile=None):
    """MIL attention pooling (PyTorch `Attention.forward`).

    x:      [B, N, L]  bags of N instances (ideally already bf16 upstream)
    w1:     [L, D]     first Linear weight, pre-transposed (torch stores (D, L))
    w2_row: [1, D]     second Linear weight, exactly torch Linear(D,1).weight

    Returns (out [B,1,L] f32, attn [B,1,N] f32); attn is softmaxed unless no_norm.
    """
    B, N, feat = x.shape
    assert feat == L_DIM, f"expected L={L_DIM}, got {feat}"
    assert w1.shape == (L_DIM, D_DIM) and w2_row.shape == (K_DIM, D_DIM)

    block_cap, vmem_cap = _chip_caps()
    stream_bytes = np.dtype(stream_dtype).itemsize
    per_token_bytes = L_DIM * stream_bytes

    # ---- token tile (flash-style N-tiling for big bags) --------------------
    n8 = _round_up(N, 8)
    if token_tile is None:
        if min(B, 8) * n8 * per_token_bytes <= block_cap:
            tn = n8                                   # whole bag in one chunk
        else:                                         # lane-aligned chunks
            tn = min(512, max(128, _round_down(
                block_cap // (min(B, 8) * per_token_bytes), 128)))
    else:
        tn = int(token_tile)
    assert tn % 8 == 0
    n_pad = _round_up(N, tn)
    nt = n_pad // tn
    if nt > 1:
        assert tn % 128 == 0, "multi-chunk token tile must be lane aligned"

    # ---- bag tile (2-D output blocks need bt % 8 == 0 or bt == padded B) ---
    if B <= 8:
        bt, b_pad = B, B
    else:
        cap_rows = max(8, _round_down(max(block_cap // (tn * per_token_bytes), 8), 8))
        bt = min(cap_rows, _round_up(B, 8))
        while bt > 8 and math.ceil(B / bt) * nt < 8:      # keep the pipeline deep
            bt = max(8, _round_down(bt // 2, 8))
        if bt > 8 and math.ceil(B / bt) < 2:              # feed both v7x cores
            bt = max(8, _round_down(math.ceil(B / 2), 8))
        b_pad = _round_up(B, bt)
    nb = b_pad // bt
    grid = (nb, nt)

    # ---- stream x in bf16, pad bags / tokens as needed ---------------------
    x_in = x.astype(stream_dtype)
    if (b_pad, n_pad) != (B, N):
        x_in = jnp.pad(x_in, ((0, b_pad - B), (0, n_pad - N), (0, 0)))
    w1_in = w1.astype(stream_dtype)
    w2_in = w2_row.astype(jnp.float32)

    # ---- VMEM budget: double-buffered blocks + actual in-kernel temporaries
    bytes_x = bt * tn * L_DIM * stream_bytes
    vmem_need = (2 * (bytes_x                            # x blocks
                      + L_DIM * D_DIM * stream_bytes     # w1
                      + D_DIM * 4                        # w2
                      + bt * L_DIM * 4                   # pooled block
                      + bt * tn * 4                      # logits block
                      + 2 * bt * 4)                      # m / l blocks
                 + bt * L_DIM * 4 + 2 * bt * 4           # acc / m / l scratch
                 + 2 * bt * tn * D_DIM * 4               # h + relu/mul temp
                 + 2 * bt * tn * L_DIM * 4               # f32 e*x product/promote
                 + 4 * bt * tn * 4                       # s / e / mask temps
                 + (4 << 20))                            # headroom
    vmem_limit = int(min(max(vmem_need, 16 << 20), vmem_cap))

    cost = pl.CostEstimate(
        flops=2 * b_pad * n_pad * (L_DIM * D_DIM + D_DIM + L_DIM),
        transcendentals=2 * b_pad * n_pad,
        bytes_accessed=(b_pad * n_pad * L_DIM * stream_bytes
                        + L_DIM * D_DIM * stream_bytes + D_DIM * 4
                        + b_pad * L_DIM * 4 + b_pad * n_pad * 4 + 2 * b_pad * 4))

    kernel = functools.partial(_attention_kernel, n_valid=N,
                               mask_tokens=(n_pad != N))
    out_shapes = (
        jax.ShapeDtypeStruct((b_pad, L_DIM), jnp.float32),    # pooled features
        jax.ShapeDtypeStruct((b_pad, n_pad), jnp.float32),    # raw logits
        jax.ShapeDtypeStruct((b_pad, 1), jnp.float32),        # softmax max m
        jax.ShapeDtypeStruct((b_pad, 1), jnp.float32),        # softmax denom l
    )
    grid_spec = pltpu.PrefetchScalarGridSpec(
        num_scalar_prefetch=0,
        grid=grid,
        in_specs=[
            pl.BlockSpec((bt, tn, L_DIM), lambda b, t: (b, t, 0)),
            pl.BlockSpec((L_DIM, D_DIM), lambda b, t: (0, 0)),
            pl.BlockSpec((K_DIM, D_DIM), lambda b, t: (0, 0)),
        ],
        out_specs=[
            pl.BlockSpec((bt, L_DIM), lambda b, t: (b, 0)),
            pl.BlockSpec((bt, tn), lambda b, t: (b, t)),
            pl.BlockSpec((bt, 1), lambda b, t: (b, 0)),
            pl.BlockSpec((bt, 1), lambda b, t: (b, 0)),
        ],
        scratch_shapes=[
            pltpu.VMEM((bt, 1, 1), jnp.float32),      # running max
            pltpu.VMEM((bt, 1, 1), jnp.float32),      # running denominator
            pltpu.VMEM((bt, 1, L_DIM), jnp.float32),  # pooled accumulator
        ],
    )
    pooled, logits, m_out, l_out = pl.pallas_call(
        kernel,
        out_shape=out_shapes,
        grid_spec=grid_spec,
        compiler_params=pltpu.CompilerParams(
            dimension_semantics=("parallel", "arbitrary"),
            vmem_limit_bytes=vmem_limit),
        cost_estimate=cost,
    )(x_in, w1_in, w2_in)

    pooled = pooled[:B]
    logits = logits[:B, :N]
    if no_norm:
        attn = logits                                   # A_ori (pre-softmax)
    else:
        # Cheap (B, N) second normalization pass using the kernel's online stats.
        attn = jnp.exp(logits - m_out[:B]) / l_out[:B]
    # Match torch Attention.forward shapes: (B, 1, L), (B, 1, N).
    return pooled[:, None, :], attn[:, None, :]


def _squeeze_dim1(a):
    # torch's .squeeze(1): drop axis 1 only when it has size 1
    return jnp.squeeze(a, axis=1) if a.shape[1] == 1 else a


def backbone_forward(x, w1, w2_row, *, return_attn=False, return_act=False,
                     no_norm=False, stream_dtype=jnp.bfloat16, token_tile=None):
    """Backbone.forward for the default config (base_attn='attn', gated=False,
    act='relu', bias=False, dropout=False, mask_enable=False)."""
    pooled, attn = attention_forward(x, w1, w2_row, no_norm=no_norm,
                                     stream_dtype=stream_dtype,
                                     token_tile=token_tile)
    pooled = _squeeze_dim1(pooled)        # DAttention: x.squeeze(1)
    attn_s = _squeeze_dim1(attn)          # DAttention: attn.squeeze(1)
    act = _squeeze_dim1(x)                # DAttention: act = x.clone().squeeze(1)
    if return_attn:
        out = [pooled, attn_s]
        if return_act:
            out.append(act)
        return out
    return pooled


def _reference(x, w1, w2_row, *, no_norm=False, stream_dtype=jnp.bfloat16):
    """Pure-JAX mirror of the PyTorch math at the kernel's streaming precision."""
    xb = x.astype(stream_dtype)
    h = jnp.einsum("bnl,ld->bnd", xb, w1.astype(stream_dtype),
                   preferred_element_type=jnp.float32)
    h = jnp.maximum(h, 0.0)
    s = jnp.einsum("bnd,kd->bkn", h, w2_row.astype(jnp.float32))   # (B,1,N)
    a = jax.nn.softmax(s, axis=-1)
    out = jnp.einsum("bkn,bnl->bkl", a, xb.astype(jnp.float32))    # (B,1,L)
    return (out, s) if no_norm else (out, a)


if __name__ == "__main__":
    key = jax.random.PRNGKey(0)
    kx, k1, k2, k3 = jax.random.split(key, 4)

    B, N = 2, 16
    x = jax.random.normal(kx, (B, N, L_DIM), dtype=jnp.float32)
    # PyTorch-compatible storage: w1 = Linear(L->D).weight^T -> (L, D);
    # w2 = Linear(D->1).weight -> (1, D)
    w1 = jax.random.normal(k1, (L_DIM, D_DIM), dtype=jnp.float32) * 0.02
    w2 = jax.random.normal(k2, (K_DIM, D_DIM), dtype=jnp.float32) * 0.02

    # ---- default path: softmaxed attention (single token chunk) -----------
    out, attn = attention_forward(x, w1, w2)
    out = jax.block_until_ready(out)
    attn = jax.block_until_ready(attn)
    ref_out, ref_attn = _reference(x, w1, w2)
    assert out.shape == (B, 1, L_DIM) and attn.shape == (B, 1, N)
    assert jnp.allclose(out, ref_out, atol=2e-3, rtol=2e-3)
    assert jnp.allclose(attn, ref_attn, atol=2e-3, rtol=2e-3)
    assert jnp.all(jnp.abs(jnp.sum(attn, axis=-1) - 1.0) < 1e-3)

    # ---- no_norm path: raw (pre-softmax) attention logits ------------------
    out_nn, attn_nn = attention_forward(x, w1, w2, no_norm=True)
    jax.block_until_ready(out_nn)
    ref_out_nn, ref_logits = _reference(x, w1, w2, no_norm=True)
    assert jnp.allclose(out_nn, ref_out_nn, atol=2e-3, rtol=2e-3)
    assert jnp.allclose(attn_nn, ref_logits, atol=2e-3, rtol=2e-3)

    # ---- flash-style token-tiled + padded path ------------------------------
    # B=9 -> bag tile 8 with one padded bag block; token_tile=128 over N=300 ->
    # 3 chunks with 84 masked pad tokens; exercises the online softmax.
    B2, N2 = 9, 300
    x2 = jax.random.normal(k3, (B2, N2, L_DIM), dtype=jnp.float32)
    out2, attn2 = attention_forward(x2, w1, w2, token_tile=128)
    out2 = jax.block_until_ready(out2)
    attn2 = jax.block_until_ready(attn2)
    ref_out2, ref_attn2 = _reference(x2, w1, w2)
    assert out2.shape == (B2, 1, L_DIM) and attn2.shape == (B2, 1, N2)
    assert jnp.allclose(out2, ref_out2, atol=2e-3, rtol=2e-3)
    assert jnp.allclose(attn2, ref_attn2, atol=2e-3, rtol=2e-3)
    assert jnp.all(jnp.abs(jnp.sum(attn2, axis=-1) - 1.0) < 1e-3)

    # ---- Backbone-level wrapper (default flags -> pooled features only) ----
    pooled = backbone_forward(x, w1, w2)
    pooled = jax.block_until_ready(pooled)
    assert pooled.shape == (B, L_DIM)
    assert jnp.allclose(pooled, jnp.squeeze(ref_out, axis=1), atol=2e-3, rtol=2e-3)

    pooled2, attn_s, act = backbone_forward(x, w1, w2, return_attn=True,
                                            return_act=True)
    jax.block_until_ready(pooled2)
    assert attn_s.shape == (B, N) and act.shape == (B, N, L_DIM)

    print("KERNEL_OK")
</pallas_src>

<mosaic_0001>
module attributes {stable_mosaic.version = 11 : i64} {
  func.func @_attention_kernel(%arg0: i32, %arg1: i32, %arg2: memref<2x16x512xbf16, #tpu.memory_space<vmem>>, %arg3: memref<512x128xbf16, #tpu.memory_space<vmem>>, %arg4: memref<1x128xf32, #tpu.memory_space<vmem>>, %arg5: memref<2x512xf32, #tpu.memory_space<vmem>>, %arg6: memref<2x16xf32, #tpu.memory_space<vmem>>, %arg7: memref<2x1xf32, #tpu.memory_space<vmem>>, %arg8: memref<2x1xf32, #tpu.memory_space<vmem>>, %arg9: memref<2x1x1xf32, #tpu.memory_space<vmem>>, %arg10: memref<2x1x1xf32, #tpu.memory_space<vmem>>, %arg11: memref<2x1x512xf32, #tpu.memory_space<vmem>>) attributes {dimension_semantics = [#tpu.dimension_semantics<parallel>, #tpu.dimension_semantics<arbitrary>], iteration_bounds = array<i64: 1, 1>, scalar_prefetch = 0 : i64, scratch_operands = 3 : i64, tpu.core_type = #tpu.core_type<tc>, window_params = [{transform_indices = @transform_0, window_bounds = array<i64: 2, 16, 512>}, {pipeline_mode = #tpu.pipeline_mode<synchronous>, transform_indices = @transform_1, window_bounds = array<i64: 512, 128>}, {pipeline_mode = #tpu.pipeline_mode<synchronous>, transform_indices = @transform_2, window_bounds = array<i64: 1, 128>}, {transform_indices = @transform_3, window_bounds = array<i64: 2, 512>}, {transform_indices = @transform_4, window_bounds = array<i64: 2, 16>}, {transform_indices = @transform_5, window_bounds = array<i64: 2, 1>}, {transform_indices = @transform_6, window_bounds = array<i64: 2, 1>}]} {
    %c0_i32 = arith.constant 0 : i32
    %0 = arith.cmpi eq, %arg1, %c0_i32 : i32
    %1 = arith.extui %0 : i1 to i32
    %c0_i32_0 = arith.constant 0 : i32
    %2 = arith.cmpi ne, %1, %c0_i32_0 : i32
    scf.if %2 {
      %cst_34 = arith.constant 0xFF800000 : f32
      %46 = vector.broadcast %cst_34 : f32 to vector<2x1x1xf32>
      %c0_35 = arith.constant 0 : index
      %c0_36 = arith.constant 0 : index
      %c0_37 = arith.constant 0 : index
      %47 = vector.load %arg9[%c0_35, %c0_36, %c0_37] : memref<2x1x1xf32, #tpu.memory_space<vmem>>, vector<2x1x1xf32>
      tpu.vector_store %arg9[%c0_35, %c0_36, %c0_37], %46 {strides = array<i32>} : memref<2x1x1xf32, #tpu.memory_space<vmem>>, vector<2x1x1xf32>,
      %cst_38 = arith.constant 0.000000e+00 : f32
      %48 = vector.broadcast %cst_38 : f32 to vector<2x1x1xf32>
      %c0_39 = arith.constant 0 : index
      %c0_40 = arith.constant 0 : index
      %c0_41 = arith.constant 0 : index
      %49 = vector.load %arg10[%c0_39, %c0_40, %c0_41] : memref<2x1x1xf32, #tpu.memory_space<vmem>>, vector<2x1x1xf32>
      tpu.vector_store %arg10[%c0_39, %c0_40, %c0_41], %48 {strides = array<i32>} : memref<2x1x1xf32, #tpu.memory_space<vmem>>, vector<2x1x1xf32>,
      %cst_42 = arith.constant 0.000000e+00 : f32
      %50 = vector.broadcast %cst_42 : f32 to vector<2x1x512xf32>
      %c0_43 = arith.constant 0 : index
      %c0_44 = arith.constant 0 : index
      %c0_45 = arith.constant 0 : index
      %51 = vector.load %arg11[%c0_43, %c0_44, %c0_45] : memref<2x1x512xf32, #tpu.memory_space<vmem>>, vector<2x1x512xf32>
      tpu.vector_store %arg11[%c0_43, %c0_44, %c0_45], %50 {strides = array<i32>} : memref<2x1x512xf32, #tpu.memory_space<vmem>>, vector<2x1x512xf32>,
    } else {
    }
    %c0 = arith.constant 0 : index
    %c0_1 = arith.constant 0 : index
    %c0_2 = arith.constant 0 : index
    %3 = vector.load %arg2[%c0, %c0_1, %c0_2] : memref<2x16x512xbf16, #tpu.memory_space<vmem>>, vector<2x16x512xbf16>
    %4 = vector.shape_cast %3 : vector<2x16x512xbf16> to vector<32x512xbf16>
    %c0_3 = arith.constant 0 : index
    %c0_4 = arith.constant 0 : index
    %5 = vector.load %arg3[%c0_3, %c0_4] : memref<512x128xbf16, #tpu.memory_space<vmem>>, vector<512x128xbf16>
    %cst = arith.constant dense<0.000000e+00> : vector<32x128xf32>
    %6 = tpu.matmul %4, %5, %cst {dimension_numbers = #tpu.dot_dimension_numbers<[1], [0], [0], [1], [0, 0, 1, 1], [], []>} : vector<32x512xbf16>, vector<512x128xbf16>, vector<32x128xf32> -> vector<32x128xf32>
    %cst_5 = arith.constant 0.000000e+00 : f32
    %7 = vector.broadcast %cst_5 : f32 to vector<32x128xf32>
    %8 = arith.maximumf %6, %7 : vector<32x128xf32>
    %c0_6 = arith.constant 0 : index
    %c0_7 = arith.constant 0 : index
    %9 = vector.load %arg4[%c0_6, %c0_7] : memref<1x128xf32, #tpu.memory_space<vmem>>, vector<1x128xf32>
    %10 = vector.broadcast %9 : vector<1x128xf32> to vector<32x128xf32>
    %11 = arith.mulf %8, %10 : vector<32x128xf32>
    %cst_8 = arith.constant dense<0.000000e+00> : vector<32xf32>
    %12 = vector.multi_reduction <add>, %11, %cst_8 [1] : vector<32x128xf32> to vector<32xf32>
    %13 = vector.shape_cast %12 : vector<32xf32> to vector<32x1xf32>
    %14 = vector.shape_cast %13 : vector<32x1xf32> to vector<2x16x1xf32>
    %15 = vector.shape_cast %14 : vector<2x16x1xf32> to vector<2x16xf32>
    %c0_9 = arith.constant 0 : index
    %c0_10 = arith.constant 0 : index
    %16 = vector.load %arg6[%c0_9, %c0_10] : memref<2x16xf32, #tpu.memory_space<vmem>>, vector<2x16xf32>
    tpu.vector_store %arg6[%c0_9, %c0_10], %15 {strides = array<i32>} : memref<2x16xf32, #tpu.memory_space<vmem>>, vector<2x16xf32>,
    %c0_11 = arith.constant 0 : index
    %c0_12 = arith.constant 0 : index
    %c0_13 = arith.constant 0 : index
    %17 = vector.load %arg9[%c0_11, %c0_12, %c0_13] : memref<2x1x1xf32, #tpu.memory_space<vmem>>, vector<2x1x1xf32>
    %cst_14 = arith.constant dense<0xFF800000> : vector<2x1xf32>
    %18 = vector.multi_reduction <maximumf>, %14, %cst_14 [1] : vector<2x16x1xf32> to vector<2x1xf32>
    %19 = vector.shape_cast %18 : vector<2x1xf32> to vector<2x1x1xf32>
    %20 = arith.maximumf %17, %19 : vector<2x1x1xf32>
    %21 = arith.subf %17, %20 : vector<2x1x1xf32>
    %22 = math.exp %21 : vector<2x1x1xf32>
    %23 = vector.broadcast %20 : vector<2x1x1xf32> to vector<2x16x1xf32>
    %24 = arith.subf %14, %23 : vector<2x16x1xf32>
    %25 = math.exp %24 : vector<2x16x1xf32>
    %c0_15 = arith.constant 0 : index
    %c0_16 = arith.constant 0 : index
    %c0_17 = arith.constant 0 : index
    %26 = vector.load %arg10[%c0_15, %c0_16, %c0_17] : memref<2x1x1xf32, #tpu.memory_space<vmem>>, vector<2x1x1xf32>
    %27 = arith.mulf %22, %26 : vector<2x1x1xf32>
    %cst_18 = arith.constant dense<0.000000e+00> : vector<2x1xf32>
    %28 = vector.multi_reduction <add>, %25, %cst_18 [1] : vector<2x16x1xf32> to vector<2x1xf32>
    %29 = vector.shape_cast %28 : vector<2x1xf32> to vector<2x1x1xf32>
    %30 = arith.addf %27, %29 : vector<2x1x1xf32>
    %c0_19 = arith.constant 0 : index
    %c0_20 = arith.constant 0 : index
    %c0_21 = arith.constant 0 : index
    %31 = vector.load %arg10[%c0_19, %c0_20, %c0_21] : memref<2x1x1xf32, #tpu.memory_space<vmem>>, vector<2x1x1xf32>
    tpu.vector_store %arg10[%c0_19, %c0_20, %c0_21], %30 {strides = array<i32>} : memref<2x1x1xf32, #tpu.memory_space<vmem>>, vector<2x1x1xf32>,
    %c0_22 = arith.constant 0 : index
    %c0_23 = arith.constant 0 : index
    %c0_24 = arith.constant 0 : index
    %32 = vector.load %arg11[%c0_22, %c0_23, %c0_24] : memref<2x1x512xf32, #tpu.memory_space<vmem>>, vector<2x1x512xf32>
    %33 = vector.broadcast %22 : vector<2x1x1xf32> to vector<2x1x512xf32>
    %34 = arith.mulf %33, %32 : vector<2x1x512xf32>
    %35 = arith.extf %3 : vector<2x16x512xbf16> to vector<2x16x512xf32>
    %36 = vector.broadcast %25 : vector<2x16x1xf32> to vector<2x16x512xf32>
    %37 = arith.mulf %36, %35 : vector<2x16x512xf32>
    %cst_25 = arith.constant dense<0.000000e+00> : vector<2x512xf32>
    %38 = vector.multi_reduction <add>, %37, %cst_25 [1] : vector<2x16x512xf32> to vector<2x512xf32>
    %39 = vector.shape_cast %38 : vector<2x512xf32> to vector<2x1x512xf32>
    %40 = arith.addf %34, %39 : vector<2x1x512xf32>
    %c0_26 = arith.constant 0 : index
    %c0_27 = arith.constant 0 : index
    %c0_28 = arith.constant 0 : index
    %41 = vector.load %arg11[%c0_26, %c0_27, %c0_28] : memref<2x1x512xf32, #tpu.memory_space<vmem>>, vector<2x1x512xf32>
    tpu.vector_store %arg11[%c0_26, %c0_27, %c0_28], %40 {strides = array<i32>} : memref<2x1x512xf32, #tpu.memory_space<vmem>>, vector<2x1x512xf32>,
    %c0_29 = arith.constant 0 : index
    %c0_30 = arith.constant 0 : index
    %c0_31 = arith.constant 0 : index
    %42 = vector.load %arg9[%c0_29, %c0_30, %c0_31] : memref<2x1x1xf32, #tpu.memory_space<vmem>>, vector<2x1x1xf32>
    tpu.vector_store %arg9[%c0_29, %c0_30, %c0_31], %20 {strides = array<i32>} : memref<2x1x1xf32, #tpu.memory_space<vmem>>, vector<2x1x1xf32>,
    %c0_i32_32 = arith.constant 0 : i32
    %43 = arith.cmpi eq, %arg1, %c0_i32_32 : i32
    %44 = arith.extui %43 : i1 to i32
    %c0_i32_33 = arith.constant 0 : i32
    %45 = arith.cmpi ne, %44, %c0_i32_33 : i32
    scf.if %45 {
      %c0_34 = arith.constant 0 : index
      %c0_35 = arith.constant 0 : index
      %c0_36 = arith.constant 0 : index
      %46 = vector.load %arg10[%c0_34, %c0_35, %c0_36] : memref<2x1x1xf32, #tpu.memory_space<vmem>>, vector<2x1x1xf32>
      %cst_37 = arith.constant 1.000000e+00 : f32
      %47 = vector.broadcast %cst_37 : f32 to vector<2x1x1xf32>
      %48 = arith.divf %47, %46 : vector<2x1x1xf32>
      %c0_38 = arith.constant 0 : index
      %c0_39 = arith.constant 0 : index
      %c0_40 = arith.constant 0 : index
      %49 = vector.load %arg11[%c0_38, %c0_39, %c0_40] : memref<2x1x512xf32, #tpu.memory_space<vmem>>, vector<2x1x512xf32>
      %50 = vector.broadcast %48 : vector<2x1x1xf32> to vector<2x1x512xf32>
      %51 = arith.mulf %49, %50 : vector<2x1x512xf32>
      %52 = vector.shape_cast %51 : vector<2x1x512xf32> to vector<2x512xf32>
      %c0_41 = arith.constant 0 : index
      %c0_42 = arith.constant 0 : index
      %53 = vector.load %arg5[%c0_41, %c0_42] : memref<2x512xf32, #tpu.memory_space<vmem>>, vector<2x512xf32>
      tpu.vector_store %arg5[%c0_41, %c0_42], %52 {strides = array<i32>} : memref<2x512xf32, #tpu.memory_space<vmem>>, vector<2x512xf32>,
      %c0_43 = arith.constant 0 : index
      %c0_44 = arith.constant 0 : index
      %c0_45 = arith.constant 0 : index
      %54 = vector.load %arg9[%c0_43, %c0_44, %c0_45] : memref<2x1x1xf32, #tpu.memory_space<vmem>>, vector<2x1x1xf32>
      %55 = vector.shape_cast %54 : vector<2x1x1xf32> to vector<2x1xf32>
      %c0_46 = arith.constant 0 : index
      %c0_47 = arith.constant 0 : index
      %56 = vector.load %arg7[%c0_46, %c0_47] : memref<2x1xf32, #tpu.memory_space<vmem>>, vector<2x1xf32>
      tpu.vector_store %arg7[%c0_46, %c0_47], %55 {strides = array<i32>} : memref<2x1xf32, #tpu.memory_space<vmem>>, vector<2x1xf32>,
      %c0_48 = arith.constant 0 : index
      %c0_49 = arith.constant 0 : index
      %c0_50 = arith.constant 0 : index
      %57 = vector.load %arg10[%c0_48, %c0_49, %c0_50] : memref<2x1x1xf32, #tpu.memory_space<vmem>>, vector<2x1x1xf32>
      %58 = vector.shape_cast %57 : vector<2x1x1xf32> to vector<2x1xf32>
      %c0_51 = arith.constant 0 : index
      %c0_52 = arith.constant 0 : index
      %59 = vector.load %arg8[%c0_51, %c0_52] : memref<2x1xf32, #tpu.memory_space<vmem>>, vector<2x1xf32>
      tpu.vector_store %arg8[%c0_51, %c0_52], %58 {strides = array<i32>} : memref<2x1xf32, #tpu.memory_space<vmem>>, vector<2x1xf32>,
    } else {
    }
    return
  }
  func.func @transform_0(%arg0: i32, %arg1: i32) -> (i32, i32, i32) {
    %c0_i32 = arith.constant 0 : i32
    %c0_i32_0 = arith.constant 0 : i32
    return %arg0, %arg1, %c0_i32 : i32, i32, i32
  }
  func.func @transform_1(%arg0: i32, %arg1: i32) -> (i32, i32) {
    %c0_i32 = arith.constant 0 : i32
    %c0_i32_0 = arith.constant 0 : i32
    %c0_i32_1 = arith.constant 0 : i32
    return %c0_i32, %c0_i32_0 : i32, i32
  }
  func.func @transform_2(%arg0: i32, %arg1: i32) -> (i32, i32) {
    %c0_i32 = arith.constant 0 : i32
    %c0_i32_0 = arith.constant 0 : i32
    %c0_i32_1 = arith.constant 0 : i32
    return %c0_i32, %c0_i32_0 : i32, i32
  }
  func.func @transform_3(%arg0: i32, %arg1: i32) -> (i32, i32) {
    %c0_i32 = arith.constant 0 : i32
    %c0_i32_0 = arith.constant 0 : i32
    return %arg0, %c0_i32 : i32, i32
  }
  func.func @transform_4(%arg0: i32, %arg1: i32) -> (i32, i32) {
    %c0_i32 = arith.constant 0 : i32
    return %arg0, %arg1 : i32, i32
  }
  func.func @transform_5(%arg0: i32, %arg1: i32) -> (i32, i32) {
    %c0_i32 = arith.constant 0 : i32
    %c0_i32_0 = arith.constant 0 : i32
    return %arg0, %c0_i32 : i32, i32
  }
  func.func @transform_6(%arg0: i32, %arg1: i32) -> (i32, i32) {
    %c0_i32 = arith.constant 0 : i32
    %c0_i32_0 = arith.constant 0 : i32
    return %arg0, %c0_i32 : i32, i32
  }
}

</mosaic_0001>

<bundles_post_ra>
// kernel: tpu_custom_call.1
= control target key start
LH: loop header
LB: loop body
LE: loop exit
PB: predicated region body
PF: predicated region fallthrough
CT: control target
= control target key end

     0   :  { %12 = vsyncpa [#allocation6], 0  ;;  %s1387_s0 = inlined_call_operand.hbm [shape: bf16[2,16,512], index: 0, kind: input, shape index: {}]   ;;  %s1388_s1 = inlined_call_operand.hbm [shape: bf16[512,128], index: 1, kind: input, shape index: {}]   ;;  %s1389_s2 = inlined_call_operand.vmem [shape: f32[1,128], index: 2, kind: input, shape index: {}]   ;;  %s1390_s3 = inlined_call_operand.hbm [shape: f32[2,512], index: 3, kind: output, shape index: {0}]   ;;  %s1391_s4 = inlined_call_operand.hbm [shape: f32[2,16], index: 4, kind: output, shape index: {1}]   ;;  %s1392_s5 = inlined_call_operand.vmem [shape: f32[2,1], index: 5, kind: output, shape index: {2}]   ;;  %s1393_s6 = inlined_call_operand.vmem [shape: f32[2,1], index: 6, kind: output, shape index: {3}]  }
   0x1   :  { %13 = vsyncpa [#allocation9], 0 }
   0x2   :  { %14 = vsyncpa [#allocation7], 0 }
   0x3   :  { %15 = vsyncpa [#allocation12], 0  ;;  %s1182_s21 = smov [#allocation5]   ;;  %s1086_s25 = scalar_lea.hbm %s1387_s0, 1024 }
   0x4   :  { %s21_s22 = sshll.u32 %s1182_s21, 4  ;;  %p1087_p0 = scmp.ne.s32.totalorder %s1387_s0, %s1086_s25  ;;  %s22_s22 = int_to_ptr.vmem [resolvable:$true] %s21_s22 }
   0x5   :  { %p1090_p1 = scmp.lt.u32.totalorder %s1086_s25, %s1387_s0 }
   0x7   :  { %p1092_p2 = pnand %p1090_p1, %p1087_p0 }
   0x9   :  { %1095 = shalt.err (!%p1092_p2)
}
   0xa   :  { %s1096_s30 = scalar_lea.vmem %s22_s22, 1024  ;;  %p1101_p4 = scmp.lt.s32.totalorder %s22_s22, %s22_s22 }
   0xb   :  { %p1097_p3 = scmp.ne.s32.totalorder %s22_s22, %s1096_s30  ;;  %p1102_p5 = scmp.lt.s32.totalorder %s1096_s30, %s1096_s30 }
   0xd   :  { %p1103_p6 = por %p1102_p5, %p1101_p4 }
   0xf   :  { %p1104_p7 = pnand %p1103_p6, %p1097_p3 }
  0x11   :  { %1107 = shalt.err (!%p1104_p7)
}
  0x12   :  { %s1183_s7 = smov 256   ;;  %s1184_s8 = smov 16  }
  0x13   :  { %27 = dma.hbm_to_vmem [thread:$0]  %s1387_s0, 1024, %s22_s22, [#allocation6], %s1183_s7, %s1183_s7, %s1184_s8  }
  0x14   :  { %s1185_s11 = smov [#allocation8]   ;;  %s1108_s15 = scalar_lea.hbm %s1388_s1, 4096 }
  0x15   :  { %s33_s12 = sshll.u32 %s1185_s11, 4  ;;  %p1109_p8 = scmp.ne.s32.totalorder %s1388_s1, %s1108_s15  ;;  %s34_s12 = int_to_ptr.vmem [resolvable:$true] %s33_s12 }
  0x16   :  { %p1112_p9 = scmp.lt.u32.totalorder %s1108_s15, %s1388_s1 }
  0x18   :  { %p1114_p10 = pnand %p1112_p9, %p1109_p8 }
  0x1a   :  { %1117 = shalt.err (!%p1114_p10)
}
  0x1b   :  { %s1118_s20 = scalar_lea.vmem %s34_s12, 4096  ;;  %p1123_p12 = scmp.lt.s32.totalorder %s34_s12, %s34_s12 }
  0x1c   :  { %p1119_p11 = scmp.ne.s32.totalorder %s34_s12, %s1118_s20  ;;  %p1124_p13 = scmp.lt.s32.totalorder %s1118_s20, %s1118_s20 }
  0x1e   :  { %p1125_p0 = por %p1124_p13, %p1123_p12 }
  0x20   :  { %p1126_p1 = pnand %p1125_p0, %p1119_p11 }
  0x22   :  { %1129 = shalt.err (!%p1126_p1)
}
  0x23   :  { %s1186_s0 = smov 64   ;;  %s1187_s21 = smov 4  }
  0x24   :  { %39 = dma.hbm_to_vmem [thread:$0]  %s1388_s1, 4096, %s34_s12, [#allocation9], %s1186_s0, %s1186_s0, %s1187_s21  }
  0x25   :  { %1174 = dma.done.wait [#allocation6], 1024  }
  0x26   :  { %1175 = vsyncadd [#allocation6], 4294966272 }
  0x27   :  { %1176 = dma.done.wait [#allocation9], 4096  }
  0x28   :  { %1177 = vsyncadd [#allocation9], 4294963200  ;;  %v1030_v0 = vld [vmem:[#allocation8 + $0x40] sm:$0xff]   ;;  %v1034_v4 = vld [vmem:[#allocation8 + $0x48] sm:$0xff]   ;;  %vm53_vm0 = vcmask 0   ;;  %vm504_vm1 = vcmask 130112  }
  0x29   :  { %v1031_v1 = vld [vmem:[#allocation8 + $0xc0] sm:$0xff]   ;;  %960 = vmatprep.subr.bf16.mxu0 %v1030_v0  ;;  %v1035_v5 = vld [vmem:[#allocation8 + $0xc8] sm:$0xff]   ;;  %v1038_v8 = vld [vmem:[#allocation8 + $0x50] sm:$0xff]   ;;  %vm515_vm2 = vcmask 1041409   ;;  %vm518_vm3 = vcmask 123904   ;;  %vm572_vm4 = vcmask 7168  }
  0x2a   :  { %v1032_v2 = vld [vmem:[#allocation8] sm:$0xff]   ;;  %988 = vmatprep.subr.bf16.mxu1 %v1031_v1  ;;  %v1036_v6 = vld [vmem:[#allocation8 + $0x8] sm:$0xff]   ;;  %v1039_v9 = vld [vmem:[#allocation8 + $0xd0] sm:$0xff]   ;;  %vm857_vm5 = vcmask 1024   ;;  %s1192_s27 = smov [#allocation11]  }
  0x2b   :  { %v1033_v3 = vld [vmem:[#allocation8 + $0x80] sm:$0xff]   ;;  %961 = vmatpush3.bf16.msra.mxu0 %v1032_v2  ;;  %v1037_v7 = vld [vmem:[#allocation8 + $0x88] sm:$0xff]   ;;  %v1040_v10 = vld [vmem:[#allocation8 + $0x10] sm:$0xff]   ;;  %s896_s28 = sshll.u32 %s1192_s27, 4  ;;  %s897_s28 = int_to_ptr.vmem [resolvable:$true] %s896_s28 }
  0x2c   :  { %989 = vmatpush3.bf16.msra.mxu1 %v1033_v3  ;;  %962 = vmatprep.subr.bf16.mxu0 %v1034_v4  ;;  %v1041_v11 = vld [vmem:[#allocation8 + $0x90] sm:$0xff]   ;;  %v1042_v12 = vld [vmem:[#allocation8 + $0x58] sm:$0xff]   ;;  %v1046_v16 = vld [vmem:[#allocation8 + $0x60] sm:$0xff]   ;;  %s1130_s29 = scalar_lea.vmem %s897_s28, 32  ;;  %p1135_p3 = scmp.lt.s32.totalorder %s897_s28, %s897_s28 }
  0x2d   :  { %990 = vmatprep.subr.bf16.mxu1 %v1035_v5  ;;  %v1043_v13 = vld [vmem:[#allocation8 + $0xd8] sm:$0xff]   ;;  %v1047_v17 = vld [vmem:[#allocation8 + $0xe0] sm:$0xff]   ;;  %v1050_v20 = vld [vmem:[#allocation8 + $0x68] sm:$0xff]   ;;  %p1131_p2 = scmp.ne.s32.totalorder %s897_s28, %s1130_s29  ;;  %p1136_p4 = scmp.lt.s32.totalorder %s1130_s29, %s1130_s29 }
  0x2e   :  { %v1044_v14 = vld [vmem:[#allocation8 + $0x18] sm:$0xff]   ;;  %v1048_v18 = vld [vmem:[#allocation8 + $0x20] sm:$0xff]   ;;  %v1051_v21 = vld [vmem:[#allocation8 + $0xe8] sm:$0xff]  }
  0x2f   :  { %963 = vmatpush3.bf16.msra.mxu0 %v1036_v6  ;;  %v1045_v15 = vld [vmem:[#allocation8 + $0x98] sm:$0xff]   ;;  %v1049_v19 = vld [vmem:[#allocation8 + $0xa0] sm:$0xff]   ;;  %v1052_v22 = vld [vmem:[#allocation8 + $0x28] sm:$0xff]   ;;  %p1137_p5 = por %p1136_p4, %p1135_p3 }
  0x30   :  { %991 = vmatpush3.bf16.msra.mxu1 %v1037_v7  ;;  %964 = vmatprep.subr.bf16.mxu0 %v1038_v8  ;;  %v1053_v23 = vld [vmem:[#allocation8 + $0xa8] sm:$0xff]   ;;  %v1054_v24 = vld [vmem:[#allocation8 + $0x70] sm:$0xff]   ;;  %v1058_v28 = vld [vmem:[#allocation8 + $0x78] sm:$0xff]  }
  0x31   :  { %992 = vmatprep.subr.bf16.mxu1 %v1039_v9  ;;  %v1055_v25 = vld [vmem:[#allocation8 + $0xf0] sm:$0xff]   ;;  %v1059_v29 = vld [vmem:[#allocation8 + $0xf8] sm:$0xff]   ;;  %v1253_v32 = vld [vmem:[#allocation5] sm:$0xff]  ;;  %p1138_p6 = pnand %p1137_p5, %p1131_p2 }
  0x32   :  { %v1056_v26 = vld [vmem:[#allocation8 + $0x30] sm:$0xff]   ;;  %v1060_v30 = vld [vmem:[#allocation8 + $0x38] sm:$0xff]   ;;  %v1257_v34 = vld [vmem:[#allocation5 + $0x8] sm:$0xff] }
  0x33   :  { %965 = vmatpush3.bf16.msra.mxu0 %v1040_v10  ;;  %v1057_v27 = vld [vmem:[#allocation8 + $0xb0] sm:$0xff]   ;;  %v1061_v31 = vld [vmem:[#allocation8 + $0xb8] sm:$0xff]   ;;  %v1265_v38 = vld [vmem:[#allocation5 + $0x20] sm:$0xff] }
  0x34   :  { %993 = vmatpush3.bf16.msra.mxu1 %v1041_v11  ;;  %966 = vmatprep.subr.bf16.mxu0 %v1042_v12  ;;  %v1255_v33 = vld [vmem:[#allocation5 + $0x10] sm:$0xff]  ;;  %v1261_v36 = vld [vmem:[#allocation5 + $0x18] sm:$0xff]  ;;  %v1275_v43 = vld [vmem:[#allocation5 + $0x28] sm:$0xff] }
  0x35   :  { %994 = vmatprep.subr.bf16.mxu1 %v1043_v13  ;;  %v919_v35 = vcombine.high %v1253_v32, %v1255_v33  ;;  %v918_v37 = vcombine.low %v1253_v32, %v1255_v33  ;;  %v1267_v39 = vld [vmem:[#allocation5 + $0x30] sm:$0xff]  ;;  %v921_v40 = vcombine.high %v1257_v34, %v1261_v36  ;;  %v920_v41 = vcombine.low %v1257_v34, %v1261_v36  ;;  %v1277_v44 = vld [vmem:[#allocation5 + $0x38] sm:$0xff] }
  0x36   :  { %v923_v42 = vcombine.high %v1265_v38, %v1267_v39  ;;  %v925_v45 = vcombine.high %v1275_v43, %v1277_v44  ;;  %v922_v46 = vcombine.low %v1265_v38, %v1267_v39  ;;  %v924_v47 = vcombine.low %v1275_v43, %v1277_v44  ;;  %v958_v61 = vld [vmem:[%s1389_s2] ss:$0 sm:$0xff] }
  0x37   :  { %967 = vmatpush3.bf16.msra.mxu0 %v1044_v14  ;;  %400 = vmatprep.mubr.bf16.mxu0 %v919_v35 }
  0x38   :  { %995 = vmatpush3.bf16.msra.mxu1 %v1045_v15  ;;  %968 = vmatprep.subr.bf16.mxu0 %v1046_v16 }
  0x39   :  { %996 = vmatprep.subr.bf16.mxu1 %v1047_v17  ;;  %449 = vmatprep.mubr.bf16.mxu1 %v921_v40 }
  0x3b   :  { %969 = vmatpush3.bf16.msra.mxu0 %v1048_v18 }
  0x3c   :  { %997 = vmatpush3.bf16.msra.mxu1 %v1049_v19  ;;  %970 = vmatprep.subr.bf16.mxu0 %v1050_v20 }
  0x3d   :  { %998 = vmatprep.subr.bf16.mxu1 %v1051_v21  ;;  %v1188_v21 = vmov -inf  }
  0x3e   :  { %54 = vst.msk [vmem:[#allocation2] sm:$0x1] %vm53_vm0, %v1188_v21  ;;  %55 = vst.msk [vmem:[#allocation2 + $0x1] sm:$0x1] %vm53_vm0, %v1188_v21 }
  0x3f   :  { %971 = vmatpush3.bf16.msra.mxu0 %v1052_v22  ;;  %v1189_v22 = vmov 0.0  }
  0x40   :  { %999 = vmatpush3.bf16.msra.mxu1 %v1053_v23  ;;  %972 = vmatprep.subr.bf16.mxu0 %v1054_v24  ;;  %56 = vst.msk [vmem:[#allocation3] sm:$0x1] %vm53_vm0, %v1189_v22  ;;  %57 = vst.msk [vmem:[#allocation3 + $0x1] sm:$0x1] %vm53_vm0, %v1189_v22  ;;  %v1190_v23 = vmov 0   ;;  %v58_v24 = vlaneseq }
  0x41   :  { %1000 = vmatprep.subr.bf16.mxu1 %v1055_v25  ;;  %1029 = vset.pattern.permute.xlu1 %v1190_v23 }
  0x42   :  { %1028 = vset.pattern.permute.xlu0 %v1190_v23  ;;  %vm1315_vm6 = vcmp.lt.s32.totalorder %v58_v24, 512 }
  0x43   :  { %973 = vmatpush3.bf16.msra.mxu0 %v1056_v26  ;;  %v494_v26 = vand.u32 127, %v58_v24  ;;  %62 = vst.msk [vmem:[#allocation4] sm:$0xf] %vm1315_vm6, %v1189_v22  ;;  %63 = vst.msk [vmem:[#allocation4 + $0x4] sm:$0xf] %vm1315_vm6, %v1189_v22 }
  0x44   :  { %1001 = vmatpush3.bf16.msra.mxu1 %v1057_v27  ;;  %974 = vmatprep.subr.bf16.mxu0 %v1058_v28  ;;  %v496_v28 = vshrl.u32 %v58_v24, 7 }
  0x45   :  { %1002 = vmatprep.subr.bf16.mxu1 %v1059_v29  ;;  %v499_v27 = vadd.s32 4294967288, %v494_v26 }
  0x47   :  { %975 = vmatpush3.bf16.msra.mxu0 %v1060_v30 }
  0x48   :  { %1003 = vmatpush3.bf16.msra.mxu1 %v1061_v31  ;;  %v502_v31 = vsub.s32 %v499_v27, %v496_v28 }
  0x4a   :  { %401 = vmatmul.mubr.bf16.vlgmr.msra.gmra.mrb[0].mxu0 %v918_v37  ;;  %v497_v37 = vsub.s32 %v494_v26, %v496_v28 }
  0x4b   :  { %450 = vmatmul.mubr.bf16.vlgmr.msra.gmra.mrb[0].mxu1 %v920_v41  ;;  %408 = vmatprep.mubr.bf16.mxu0 %v923_v42 }
  0x4c   :  { %457 = vmatprep.mubr.bf16.mxu1 %v925_v45 }
  0x52   :  { %409 = vmatmul.mubr.bf16.gmra.mrb[4].mxu0 %v922_v46 }
  0x53   :  { %458 = vmatmul.mubr.bf16.gmra.mrb[4].mxu1 %v924_v47 }
 0x11d   :  { %v976_v48 = vpop.f32.mrb[0].mxu0 }
 0x11e   :  { %v1004_v49 = vpop.f32.mrb[0].mxu1  ;;  %v977_v50 = vpop.f32.mrb[1].mxu0 }
 0x11f   :  { %v978_v51 = vadd.f32 %v977_v50, %v976_v48  ;;  %v1005_v52 = vpop.f32.mrb[1].mxu1  ;;  %v979_v53 = vpop.f32.mrb[2].mxu0 }
 0x120   :  { %v1006_v54 = vadd.f32 %v1005_v52, %v1004_v49  ;;  %v1007_v55 = vpop.f32.mrb[2].mxu1  ;;  %v980_v56 = vpop.f32.mrb[3].mxu0 }
 0x121   :  { %v981_v57 = vadd.f32 %v980_v56, %v979_v53  ;;  %v1008_v58 = vpop.f32.mrb[3].mxu1  ;;  %v520_v56 = vld [vmem:[#allocation2] sm:$0x1] }
 0x122   :  { %v1009_v59 = vadd.f32 %v1008_v58, %v1007_v55  ;;  %v452_v60 = vadd.f32 %v1006_v54, %v978_v51  ;;  %v1296_v58 = vsub.s32 0, %v496_v28 }
 0x124   :  { %v455_v62 = vadd.f32 %v1009_v59, %v981_v57  ;;  %v466_v63 = vmax.f32 %v452_v60, 0.0 }
 0x125   :  { %v982_v0 = vpop.f32.mrb[4].mxu0 }
 0x126   :  { %v467_v1 = vmax.f32 %v455_v62, 0.0  ;;  %v1010_v2 = vpop.f32.mrb[4].mxu1  ;;  %v983_v3 = vpop.f32.mrb[5].mxu0  ;;  %v477_v4 = vmul.f32 %v958_v61, %v466_v63 }
 0x127   :  { %v984_v5 = vadd.f32 %v983_v3, %v982_v0  ;;  %v1011_v6 = vpop.f32.mrb[5].mxu1  ;;  %v985_v7 = vpop.f32.mrb[6].mxu0 }
 0x128   :  { %v1012_v8 = vadd.f32 %v1011_v6, %v1010_v2  ;;  %v1013_v9 = vpop.f32.mrb[6].mxu1  ;;  %481 = vadd.xlane.f32.xlu0 %v477_v4  ;;  %v986_v10 = vpop.f32.mrb[7].mxu0  ;;  %v478_v14 = vmul.f32 %v958_v61, %v467_v1  ;;  %v521_v4 = vld [vmem:[#allocation2 + $0x1] sm:$0x1] }
 0x129   :  { %v987_v11 = vadd.f32 %v986_v10, %v985_v7  ;;  %v1014_v12 = vpop.f32.mrb[7].mxu1 }
 0x12a   :  { %v1015_v13 = vadd.f32 %v1014_v12, %v1013_v9  ;;  %v460_v15 = vadd.f32 %v1012_v8, %v984_v5  ;;  %v1191_v8 = vmov 1966171168  }
 0x12b   :  { %v737_v9 = vunpack.c.l.s4 %v1191_v8 }
 0x12c   :  { %v463_v16 = vadd.f32 %v1015_v13, %v987_v11  ;;  %483 = vadd.xlane.f32.xlu0 %v478_v14  ;;  %v468_v17 = vmax.f32 %v460_v15, 0.0 }
 0x12d   :  { %v738_v12 = vunpack.c.0.s8 %v737_v9 }
 0x12e   :  { %v469_v18 = vmax.f32 %v463_v16, 0.0  ;;  %v479_v19 = vmul.f32 %v958_v61, %v468_v17 }
 0x130   :  { %485 = vadd.xlane.f32.xlu1 %v479_v19  ;;  %v480_v20 = vmul.f32 %v958_v61, %v469_v18  ;;  %v1302_v18 = vsub.s32 %v738_v12, %v496_v28 }
 0x134   :  { %487 = vadd.xlane.f32.xlu1 %v480_v20 }
 0x1b5   :  { %v482_v25 = vpop.xlane.xlu0 %481 }
 0x1b6   :  { %v498_v46 = vrot.slane %v482_v25, %v497_v37 }
 0x1b9   :  { %v484_v29 = vpop.xlane.xlu0 %483 }
 0x1ba   :  { %v522_v30 = vmax.f32 %v482_v25, %v484_v29  ;;  %v503_v42 = vrot.slane %v484_v29, %v502_v31 }
 0x1bc   :  { %v523_v35 = vrot.slane %v522_v30, 4  ;;  %v505_v54 = vsel %vm504_vm1, %v503_v42, %v498_v46 }
 0x1bd   :  { %v486_v40 = vpop.xlane.xlu1 %485 }
 0x1be   :  { %v524_v41 = vmax.f32 %v522_v30, %v523_v35  ;;  %v509_v49 = vrot.slane %v486_v40, %v497_v37 }
 0x1c0   :  { %v525_v45 = vrot.slane %v524_v41, 2 }
 0x1c1   :  { %v488_v47 = vpop.xlane.xlu1 %487 }
 0x1c2   :  { %v526_v48 = vmax.f32 %v524_v41, %v525_v45  ;;  %v513_v50 = vrot.slane %v488_v47, %v502_v31  ;;  %v529_v51 = vmax.f32 %v486_v40, %v488_v47 }
 0x1c4   :  { %v527_v52 = vrot.slane %v526_v48, 1  ;;  %v530_v53 = vrot.slane %v529_v51, 4  ;;  %v514_v55 = vsel %vm504_vm1, %v513_v50, %v509_v49 }
 0x1c5   :  { %v516_v57 = vsel %vm515_vm2, %v514_v55, %v505_v54 }
 0x1c6   :  { %v528_v59 = vmax.f32 %v526_v48, %v527_v52  ;;  %v531_v60 = vmax.f32 %v529_v51, %v530_v53  ;;  %519 = vst.msk [vmem:[#allocation11] sm:$0x3] %vm518_vm3, %v516_v57  ;;  %v568_v53 = vld [vmem:[#allocation3] sm:$0x1] }
 0x1c8   :  { %v536_v61 = vmax.f32 %v520_v56, %v528_v59  ;;  %v532_v62 = vrot.slane %v531_v60, 2 }
 0x1ca   :  { %v549_v63 = vrot.slane %v536_v61, %v1296_v58  ;;  %792 = vst.msk [vmem:[#allocation2] sm:$0x1] %vm53_vm0, %v536_v61  ;;  %v533_v0 = vmax.f32 %v531_v60, %v532_v62  ;;  %v538_v13 = vsub.f32 %v520_v56, %v536_v61 }
 0x1cc   :  { %v556_v1 = vsub.f32 %v482_v25, %v549_v63  ;;  %v557_v2 = vsub.f32 %v484_v29, %v549_v63  ;;  %v534_v3 = vrot.slane %v533_v0, 1  ;;  %v540_v19 = vmul.f32 1.442695, %v538_v13  ;;  %v569_v63 = vld [vmem:[#allocation3 + $0x1] sm:$0x1] }
 0x1ce   :  { %v560_v5 = vmul.f32 1.442695, %v556_v1  ;;  %v562_v6 = vmul.f32 1.442695, %v557_v2  ;;  %v535_v7 = vmax.f32 %v533_v0, %v534_v3 }
 0x1d0   :  { %1070 = vpow2.f32 %v560_v5  ;;  %v537_v10 = vmax.f32 %v521_v4, %v535_v7 }
 0x1d1   :  { %1072 = vpow2.f32 %v562_v6  ;;  %v837_v20 = vld [vmem:[#allocation2] sm:$0x1] }
 0x1d2   :  { %v553_v11 = vrot.slane %v537_v10, %v1296_v58  ;;  %793 = vst.msk [vmem:[#allocation2 + $0x1] sm:$0x1] %vm53_vm0, %v537_v10  ;;  %v539_v30 = vsub.f32 %v521_v4, %v537_v10 }
 0x1d4   :  { %v558_v14 = vsub.f32 %v486_v40, %v553_v11  ;;  %v559_v15 = vsub.f32 %v488_v47, %v553_v11  ;;  %v542_v40 = vmul.f32 1.442695, %v539_v30 }
 0x1d6   :  { %v564_v16 = vmul.f32 1.442695, %v558_v14  ;;  %v566_v17 = vmul.f32 1.442695, %v559_v15 }
 0x1d8   :  { %1074 = vpow2.f32 %v564_v16 }
 0x1d9   :  { %1076 = vpow2.f32 %v566_v17  ;;  %v838_v21 = vld [vmem:[#allocation2 + $0x1] sm:$0x1] }
 0x1da   :  { %v1071_v23 = vpop.eup %1070  ;;  %v841_v25 = vcombine.low %v837_v20, %v838_v21  ;;  %1078 = vpow2.f32 %v540_v19 }
 0x1db   :  { %v1073_v26 = vpop.eup %1072  ;;  %v573_v27 = vsel %vm572_vm4, %v1071_v23, 0.0  ;;  %636 = vperm.xlu0 %1028, %v1071_v23   ;;  %1080 = vpow2.f32 %v542_v40 }
 0x1dc   :  { %v574_v29 = vsel %vm572_vm4, %v1073_v26, 0.0  ;;  %v848_v31 = vrot.slane %v841_v25, %v1302_v18  ;;  %641 = vperm.xlu1 %1029, %v1073_v26  }
 0x1dd   :  { %v575_v28 = vadd.f32 %v574_v29, %v573_v27 }
 0x1de   :  { %v855_v35 = vrot.slane %v848_v31, %v1302_v18 }
 0x1df   :  { %v576_v37 = vrot.slane %v575_v28, 4 }
 0x1e0   :  { %858 = vst.msk [vmem:[%s1392_s5] sm:$0x3] %vm857_vm5, %v855_v35 }
 0x1e1   :  { %v577_v41 = vadd.f32 %v576_v37, %v575_v28 }
 0x1e2   :  { %v1075_v42 = vpop.eup %1074 }
 0x1e3   :  { %v1077_v45 = vpop.eup %1076  ;;  %v578_v46 = vrot.slane %v577_v41, 2  ;;  %v582_v47 = vsel %vm572_vm4, %v1075_v42, 0.0  ;;  %646 = vperm.xlu1 %1029, %v1075_v42  }
 0x1e4   :  { %v583_v48 = vsel %vm572_vm4, %v1077_v45, 0.0  ;;  %v1079_v52 = vpop.eup %1078 }
 0x1e5   :  { %v579_v49 = vadd.f32 %v578_v46, %v577_v41  ;;  %v584_v50 = vadd.f32 %v583_v48, %v582_v47  ;;  %v570_v56 = vmul.f32 %v1079_v52, %v568_v53  ;;  %v1081_v62 = vpop.eup %1080 }
 0x1e6   :  { %v571_v1 = vmul.f32 %v1081_v62, %v569_v63 }
 0x1e7   :  { %v580_v54 = vrot.slane %v579_v49, 1  ;;  %v585_v55 = vrot.slane %v584_v50, 4  ;;  %651 = vperm.xlu1 %1029, %v1077_v45  }
 0x1e9   :  { %v581_v57 = vadd.f32 %v580_v54, %v579_v49  ;;  %v586_v59 = vadd.f32 %v585_v55, %v584_v50 }
 0x1eb   :  { %v591_v24 = vadd.f32 %v581_v57, %v570_v56  ;;  %v587_v60 = vrot.slane %v586_v59, 2  ;;  %600 = vperm.xlu1 %1029, %v1079_v52  }
 0x1ed   :  { %594 = vst.msk [vmem:[#allocation3] sm:$0x1] %vm53_vm0, %v591_v24  ;;  %v588_v61 = vadd.f32 %v587_v60, %v586_v59 }
 0x1ef   :  { %v589_v0 = vrot.slane %v588_v61, 1  ;;  %609 = vperm.xlu1 %1029, %v1081_v62  }
 0x1f1   :  { %v590_v2 = vadd.f32 %v589_v0, %v588_v61 }
 0x1f3   :  { %v592_v3 = vadd.f32 %v590_v2, %v571_v1 }
 0x1f4   :  { %v797_v22 = vld [vmem:[#allocation3] sm:$0x1] }
 0x1f5   :  { %595 = vst.msk [vmem:[#allocation3 + $0x1] sm:$0x1] %vm53_vm0, %v592_v3  ;;  %1082 = vrcp.f32 %v797_v22  ;;  %v859_v4 = vld [vmem:[#allocation3] sm:$0x1] }
 0x1fc   :  { %v860_v5 = vld [vmem:[#allocation3 + $0x1] sm:$0x1] }
 0x1fd   :  { %v798_v6 = vld [vmem:[#allocation3 + $0x1] sm:$0x1]  ;;  %v863_v7 = vcombine.low %v859_v4, %v860_v5 }
 0x1fe   :  { %1084 = vrcp.f32 %v798_v6 }
 0x1ff   :  { %v1083_v8 = vpop.eup %1082  ;;  %v870_v9 = vrot.slane %v863_v7, %v1302_v18 }
 0x200   :  { %807 = vperm.xlu1 %1029, %v1083_v8  }
 0x201   :  { %v877_v10 = vrot.slane %v870_v9, %v1302_v18 }
 0x203   :  { %879 = vst.msk [vmem:[%s1393_s6] sm:$0x3] %vm857_vm5, %v877_v10 }
 0x208   :  { %v1085_v11 = vpop.eup %1084 }
 0x209   :  { %816 = vperm.xlu1 %1029, %v1085_v11  }
 0x20a   :  { %1141 = shalt.err (!%p1138_p6)
}
 0x20b   :  { %s1142_s8 = scalar_lea.hbm %s1391_s4, 32 }
 0x20c   :  { %p1143_p7 = scmp.ne.s32.totalorder %s1391_s4, %s1142_s8  ;;  %p1146_p8 = scmp.lt.u32.totalorder %s1142_s8, %s1391_s4 }
 0x20e   :  { %p1148_p9 = pnand %p1146_p8, %p1143_p7 }
 0x210   :  { %1151 = shalt.err (!%p1148_p9)
}
 0x211   :  { %899 = dma.vmem_to_hbm [thread:$0]  %s897_s28, 32, %s1391_s4, [#allocation12]   ;;  %v618_v12 = vunpack.c.l.bf16 %v1253_v32  ;;  %v619_v13 = vunpack.c.h.bf16 %v1253_v32  ;;  %v620_v14 = vunpack.c.l.bf16 %v1257_v34  ;;  %v621_v15 = vunpack.c.h.bf16 %v1257_v34 }
 0x212   :  { %v622_v16 = vunpack.c.l.bf16 %v1255_v33  ;;  %v623_v17 = vunpack.c.h.bf16 %v1255_v33  ;;  %v624_v19 = vunpack.c.l.bf16 %v1261_v36  ;;  %v625_v20 = vunpack.c.h.bf16 %v1261_v36  ;;  %s1193_s4 = smov [#allocation10]  }
 0x213   :  { %v626_v36 = vunpack.c.l.bf16 %v1265_v38  ;;  %v627_v46 = vunpack.c.h.bf16 %v1265_v38  ;;  %v628_v47 = vunpack.c.l.bf16 %v1275_v43  ;;  %v629_v48 = vunpack.c.h.bf16 %v1275_v43  ;;  %s886_s14 = sshll.u32 %s1193_s4, 4  ;;  %s887_s14 = int_to_ptr.vmem [resolvable:$true] %s886_s14 }
 0x214   :  { %v630_v55 = vunpack.c.l.bf16 %v1267_v39  ;;  %v631_v56 = vunpack.c.h.bf16 %v1267_v39  ;;  %v632_v57 = vunpack.c.l.bf16 %v1277_v44  ;;  %v633_v59 = vunpack.c.h.bf16 %v1277_v44  ;;  %s1152_s15 = scalar_lea.vmem %s887_s14, 128  ;;  %p1157_p11 = scmp.lt.s32.totalorder %s887_s14, %s887_s14 }
 0x215   :  { %p1153_p10 = scmp.ne.s32.totalorder %s887_s14, %s1152_s15  ;;  %p1158_p12 = scmp.lt.s32.totalorder %s1152_s15, %s1152_s15 }
 0x217   :  { %p1159_p13 = por %p1158_p12, %p1157_p11 }
 0x219   :  { %p1160_p0 = pnand %p1159_p13, %p1153_p10 }
 0x25a   :  { %v637_v21 = vpop.permute.xlu0 %636 }
 0x25b   :  { %v642_v23 = vpop.permute.xlu1 %641  ;;  %v654_v25 = vmul.f32 %v637_v21, %v618_v12  ;;  %v655_v26 = vmul.f32 %v637_v21, %v619_v13  ;;  %v656_v27 = vmul.f32 %v637_v21, %v620_v14  ;;  %v657_v29 = vmul.f32 %v637_v21, %v621_v15 }
 0x25c   :  { %v658_v30 = vmul.f32 %v642_v23, %v622_v16  ;;  %v659_v32 = vmul.f32 %v642_v23, %v623_v17  ;;  %v660_v31 = vmul.f32 %v642_v23, %v624_v19  ;;  %v661_v28 = vmul.f32 %v642_v23, %v625_v20 }
 0x25e   :  { %v670_v35 = vadd.f32 %v658_v30, %v654_v25  ;;  %v677_v34 = vadd.f32 %v659_v32, %v655_v26  ;;  %v684_v37 = vadd.f32 %v660_v31, %v656_v27  ;;  %v691_v40 = vadd.f32 %v661_v28, %v657_v29 }
 0x260   :  { %v671_v41 = vrot.slane %v670_v35, 4  ;;  %v678_v33 = vrot.slane %v677_v34, 4  ;;  %v685_v42 = vrot.slane %v684_v37, 4  ;;  %v692_v45 = vrot.slane %v691_v40, 4 }
 0x262   :  { %v672_v49 = vadd.f32 %v671_v41, %v670_v35  ;;  %v679_v50 = vadd.f32 %v678_v33, %v677_v34  ;;  %v686_v52 = vadd.f32 %v685_v42, %v684_v37  ;;  %v693_v53 = vadd.f32 %v692_v45, %v691_v40  ;;  %v647_v54 = vpop.permute.xlu1 %646  ;;  %v596_v45 = vld [vmem:[#allocation4] sm:$0xf] }
 0x263   :  { %v662_v62 = vmul.f32 %v647_v54, %v626_v36  ;;  %v663_v63 = vmul.f32 %v647_v54, %v627_v46  ;;  %v664_v43 = vmul.f32 %v647_v54, %v628_v47  ;;  %v665_v0 = vmul.f32 %v647_v54, %v629_v48 }
 0x264   :  { %v673_v24 = vrot.slane %v672_v49, 2  ;;  %v680_v60 = vrot.slane %v679_v50, 2  ;;  %v687_v38 = vrot.slane %v686_v52, 2  ;;  %v694_v61 = vrot.slane %v693_v53, 2 }
 0x266   :  { %v674_v1 = vadd.f32 %v673_v24, %v672_v49  ;;  %v681_v2 = vadd.f32 %v680_v60, %v679_v50  ;;  %v688_v3 = vadd.f32 %v687_v38, %v686_v52  ;;  %v695_v22 = vadd.f32 %v694_v61, %v693_v53  ;;  %v652_v4 = vpop.permute.xlu1 %651 }
 0x267   :  { %v666_v5 = vmul.f32 %v652_v4, %v630_v55  ;;  %v667_v6 = vmul.f32 %v652_v4, %v631_v56  ;;  %v668_v39 = vmul.f32 %v652_v4, %v632_v57  ;;  %v669_v7 = vmul.f32 %v652_v4, %v633_v59 }
 0x268   :  { %v675_v8 = vrot.slane %v674_v1, 1  ;;  %v682_v9 = vrot.slane %v681_v2, 1  ;;  %v689_v44 = vrot.slane %v688_v3, 1  ;;  %v696_v10 = vrot.slane %v695_v22, 1 }
 0x269   :  { %v698_v11 = vadd.f32 %v666_v5, %v662_v62  ;;  %v705_v12 = vadd.f32 %v667_v6, %v663_v63  ;;  %v712_v13 = vadd.f32 %v668_v39, %v664_v43  ;;  %v719_v14 = vadd.f32 %v669_v7, %v665_v0 }
 0x26a   :  { %v676_v15 = vadd.f32 %v675_v8, %v674_v1  ;;  %v683_v16 = vadd.f32 %v682_v9, %v681_v2  ;;  %v690_v17 = vadd.f32 %v689_v44, %v688_v3  ;;  %v697_v19 = vadd.f32 %v696_v10, %v695_v22  ;;  %v601_v26 = vpop.permute.xlu1 %600  ;;  %v597_v2 = vld [vmem:[#allocation4 + $0x4] sm:$0xf] }
 0x26b   :  { %v699_v20 = vrot.slane %v698_v11, 4  ;;  %v706_v21 = vrot.slane %v705_v12, 4  ;;  %v713_v23 = vrot.slane %v712_v13, 4  ;;  %v720_v25 = vrot.slane %v719_v14, 4 }
 0x26c   :  { %v734_v27 = vcombine.low %v676_v15, %v683_v16  ;;  %v735_v29 = vcombine.low %v690_v17, %v697_v19  ;;  %v606_v37 = vrot.slane %v601_v26, %v1296_v58 }
 0x26d   :  { %v700_v30 = vadd.f32 %v699_v20, %v698_v11  ;;  %v707_v32 = vadd.f32 %v706_v21, %v705_v12  ;;  %v714_v31 = vadd.f32 %v713_v23, %v712_v13  ;;  %v721_v28 = vadd.f32 %v720_v25, %v719_v14 }
 0x26e   :  { %v742_v35 = vrot.slane %v734_v27, %v1302_v18  ;;  %v749_v34 = vrot.slane %v735_v29, %v1302_v18  ;;  %v616_v52 = vmul.f32 %v606_v37, %v596_v45  ;;  %v610_v61 = vpop.permute.xlu1 %609 }
 0x26f   :  { %v701_v40 = vrot.slane %v700_v30, 2  ;;  %v708_v41 = vrot.slane %v707_v32, 2  ;;  %v715_v33 = vrot.slane %v714_v31, 2  ;;  %v722_v42 = vrot.slane %v721_v28, 2 }
 0x270   :  { %v750_v36 = vcombine.low %v742_v35, %v749_v34  ;;  %v615_v1 = vrot.slane %v610_v61, %v1296_v58 }
 0x271   :  { %v702_v46 = vadd.f32 %v701_v40, %v700_v30  ;;  %v709_v47 = vadd.f32 %v708_v41, %v707_v32  ;;  %v716_v48 = vadd.f32 %v715_v33, %v714_v31  ;;  %v723_v49 = vadd.f32 %v722_v42, %v721_v28 }
 0x272   :  { %v757_v50 = vrot.slane %v750_v36, %v1302_v18  ;;  %v617_v4 = vmul.f32 %v615_v1, %v597_v2 }
 0x273   :  { %v703_v53 = vrot.slane %v702_v46, 1  ;;  %v710_v54 = vrot.slane %v709_v47, 1  ;;  %v717_v55 = vrot.slane %v716_v48, 1  ;;  %v724_v56 = vrot.slane %v723_v49, 1 }
 0x274   :  { %v784_v57 = vadd.f32 %v757_v50, %v616_v52 }
 0x275   :  { %v704_v59 = vadd.f32 %v703_v53, %v702_v46  ;;  %v711_v24 = vadd.f32 %v710_v54, %v709_v47  ;;  %v718_v60 = vadd.f32 %v717_v55, %v716_v48  ;;  %v725_v38 = vadd.f32 %v724_v56, %v723_v49 }
 0x276   :  { %790 = vst.msk [vmem:[#allocation4] sm:$0xf] %vm1315_vm6, %v784_v57 }
 0x277   :  { %v758_v62 = vcombine.low %v704_v59, %v711_v24  ;;  %v759_v63 = vcombine.low %v718_v60, %v725_v38 }
 0x279   :  { %v766_v43 = vrot.slane %v758_v62, %v1302_v18  ;;  %v773_v0 = vrot.slane %v759_v63, %v1302_v18 }
 0x27b   :  { %v774_v3 = vcombine.low %v766_v43, %v773_v0 }
 0x27d   :  { %v781_v22 = vrot.slane %v774_v3, %v1302_v18  ;;  %v803_v44 = vld [vmem:[#allocation4] sm:$0xf] }
 0x27f   :  { %v785_v5 = vadd.f32 %v781_v22, %v617_v4  ;;  %v808_v6 = vpop.permute.xlu1 %807 }
 0x280   :  { %v813_v39 = vrot.slane %v808_v6, %v1296_v58 }
 0x281   :  { %791 = vst.msk [vmem:[#allocation4 + $0x4] sm:$0xf] %vm1315_vm6, %v785_v5 }
 0x282   :  { %v823_v10 = vmul.f32 %v813_v39, %v803_v44 }
 0x288   :  { %v817_v7 = vpop.permute.xlu1 %816  ;;  %v804_v8 = vld [vmem:[#allocation4 + $0x4] sm:$0xf] }
 0x289   :  { %v822_v9 = vrot.slane %v817_v7, %v1296_v58 }
 0x28b   :  { %v824_v11 = vmul.f32 %v822_v9, %v804_v8 }
 0x28d   :  { %v827_v12 = vcombine.low %v823_v10, %v824_v11 }
 0x28f   :  { %959 = vst.sshfl [vmem:[#allocation10] sm:$0xff pattern:$0x75316420] %v827_v12 }
 0x290   :  { %1163 = shalt.err (!%p1160_p0)
}
 0x291   :  { %s1164_s18 = scalar_lea.hbm %s1390_s3, 128 }
 0x292   :  { %p1165_p1 = scmp.ne.s32.totalorder %s1390_s3, %s1164_s18  ;;  %p1168_p2 = scmp.lt.u32.totalorder %s1164_s18, %s1390_s3 }
 0x294   :  { %p1170_p3 = pnand %p1168_p2, %p1165_p1 }
 0x296   :  { %1173 = shalt.err (!%p1170_p3)
}
 0x297   :  { %889 = dma.vmem_to_hbm [thread:$0]  %s887_s14, 128, %s1390_s3, [#allocation7]  }
 0x298   :  { %1178 = dma.done.wait [#allocation7], 128  }
 0x299   :  { %1179 = vsyncadd [#allocation7], 4294967168 }
 0x29a   :  { %1180 = dma.done.wait [#allocation12], 32  }
 0x29b   :  { %1181 = vsyncadd [#allocation12], 4294967264 }
 0x29c   :  { %914 = vsyncpa [#allocation6], 1 }
 0x29d   :  { %915 = vsyncpa [#allocation9], 1 }
 0x29e   :  { %916 = vsyncpa [#allocation7], 1 }
 0x29f   :  { %917 = vsyncpa [#allocation12], 1 }

</bundles_post_ra>
